<compile_context>
chip_gen: v6e
topology: v6e:2x2x1
jax: 0.10.0
libtpu: 0.0.40
codegen_flags: <defaults>
</compile_context>

<pallas_src>
import math

import jax
import jax.numpy as jnp
from jax.experimental import pallas as pl
from jax.experimental.pallas import tpu as pltpu


_MIN_LANE = 128   # below this, output stores are lane-sparse -> XLA fallback


def _sublane_pack(dtype) -> int:
    """Second-minor tiling multiple for dtype (8 for 4B, 16 for 2B, 32 for 1B)."""
    itemsize = jnp.dtype(dtype).itemsize
    return 8 * max(1, 4 // itemsize)


def _pick_tile(dim: int, align: int, cap: int) -> int:
    """Largest align-multiple tile <= cap, or the full extent if it fits."""
    if dim <= cap:
        return dim                      # full extent is always layout-legal
    return max(align, (cap // align) * align)


def _vmem_config():
    """(big_vmem, vmem_limit_bytes): generation-aware VMEM budget."""
    phys = 64 * 1024 * 1024             # conservative default = v7x-class VMEM
    try:
        info = pltpu.get_tpu_info()
        for name in ("vmem_capacity_bytes", "vmem_size_bytes", "vmem_bytes"):
            val = getattr(info, name, None)
            if val:
                phys = int(val)
                break
    except Exception:                   # no queryable TPU info at trace time
        pass
    big_vmem = phys >= 128 * 1024 * 1024        # v5e / v6e
    vmem_limit = min(64 * 1024 * 1024, phys // 2)
    return big_vmem, vmem_limit


def _make_block_spec(block_shape, index_map, buffer_count=None):
    """BlockSpec with optional N-deep multi-buffering (pipeline_mode)."""
    if buffer_count is not None and hasattr(pl, "Buffered"):
        try:
            return pl.BlockSpec(block_shape, index_map,
                                pipeline_mode=pl.Buffered(buffer_count))
        except Exception:               # older jax without pipeline_mode support
            pass
    return pl.BlockSpec(block_shape, index_map)


def _collapse(shape, dims):
    """Drop size-1 axes and merge runs of input axes that stay adjacent and
    in-order in both input and output.  Returns (new_shape, new_dims)."""
    shape = tuple(int(s) for s in shape)
    # Size-1 input axes carry no ordering information: drop them.
    keep = [i for i in range(len(shape)) if shape[i] != 1]
    remap = {old: new for new, old in enumerate(keep)}
    shape = tuple(shape[i] for i in keep)
    dims = tuple(remap[d] for d in dims if d in remap)
    if not shape:
        return (), ()
    # Group input axes that appear consecutively (and in input order) in the
    # output; each group becomes a single merged axis.
    groups = [[dims[0]]]
    for d in dims[1:]:
        if d == groups[-1][-1] + 1:
            groups[-1].append(d)
        else:
            groups.append([d])
    in_order = sorted(range(len(groups)), key=lambda g: groups[g][0])
    rank = {g: r for r, g in enumerate(in_order)}
    new_shape = tuple(math.prod(shape[ax] for ax in groups[g]) for g in in_order)
    new_dims = tuple(rank[g] for g in range(len(groups)))
    return new_shape, new_dims


def _permute_lane_preserving(x: jax.Array, dims) -> jax.Array:
    """Tiled Pallas permute for permutations where the input's last (lane)
    axis ends up in one of the last two output positions."""
    ndim = x.ndim
    out_shape = tuple(x.shape[d] for d in dims)
    a, b = dims[-2], dims[-1]           # input axes feeding the last 2 output axes
    assert (ndim - 1) in (a, b)
    transpose = a > b                   # input lane axis becomes output axis -2
    lead_in_axes = dims[:-2]            # input axis for each leading output axis
    n_lead = ndim - 2

    itemsize = jnp.dtype(x.dtype).itemsize
    scale = max(1, 4 // itemsize)       # lane-cap scaling: 1 f32, 2 bf16, 4 int8
    pack = _sublane_pack(x.dtype)       # 8 / 16 / 32 sublane tiling
    big_vmem, vmem_limit = _vmem_config()

    # "Padded input" branch: the input's second-minor axis is one of the
    # squeezed leading axes, so the input VMEM rows pad to a full sublane pack
    # and the input DMA is strided (short contiguous rows).
    padded_input = bool(n_lead) and (ndim - 2) not in (a, b)
    if padded_input:
        # Physical input buffer ~= t_a * pack * t_b * itemsize; budget ~4 MiB.
        # Prioritize cap_b (the contiguous lane run length) for narrow dtypes.
        cap_b = 512 * scale
        cap_a = max(pack, (4 * 1024 * 1024) // (pack * itemsize * cap_b))
        in_buffers = 3                  # deeper buffering hides strided-DMA latency
    else:
        # Dense blocks: ~2 MiB per buffer (~4 MiB on 128-MiB-VMEM v5e/v6e);
        # byte-based so bf16/int8 tiles match f32 in bytes, not elements.
        budget = (4 if big_vmem else 2) * 1024 * 1024
        cap_b = 1024 * scale
        cap_a = max(pack, budget // (itemsize * cap_b))
        in_buffers = None

    # t_b is the output lane dim -> multiple of 128 (or full extent).  t_a is
    # the output sublane dim -> dtype sublane pack, or 128 when it is also the
    # *input* lane axis (transpose case): keeps the input DMA lane-dense and
    # the XLU transpose a whole number of native tiles.
    align_a = 128 if transpose else pack
    t_a = _pick_tile(x.shape[a], align_a, cap_a)
    t_b = _pick_tile(x.shape[b], 128, cap_b)

    # Innermost grid axis walks the output's lane-dim blocks -> contiguous
    # HBM writeback.
    grid = tuple(out_shape[:n_lead]) + (
        pl.cdiv(x.shape[a], t_a),
        pl.cdiv(x.shape[b], t_b),
    )

    in_block = [None] * ndim            # None == squeezed size-1 dim
    in_block[a] = t_a
    in_block[b] = t_b
    out_block = [None] * n_lead + [t_a, t_b]

    def in_index_map(*g):
        lead, gi, gj = g[:n_lead], g[n_lead], g[n_lead + 1]
        idx = [0] * ndim
        for coord, ax in zip(lead, lead_in_axes):
            idx[ax] = coord
        idx[a] = gi
        idx[b] = gj
        return tuple(idx)

    def out_index_map(*g):              # grid is already in output order
        return g

    if transpose:
        def kernel(x_ref, o_ref):       # x_ref: (t_b, t_a) in input-axis order
            o_ref[...] = x_ref[...].T   # single 2-D XLU transpose
    else:
        def kernel(x_ref, o_ref):       # x_ref: (t_a, t_b)
            o_ref[...] = x_ref[...]     # pure copy (hidden under the DMAs)

    return pl.pallas_call(
        kernel,
        out_shape=jax.ShapeDtypeStruct(out_shape, x.dtype),
        grid=grid,
        in_specs=[_make_block_spec(tuple(in_block), in_index_map, in_buffers)],
        out_specs=pl.BlockSpec(tuple(out_block), out_index_map),
        compiler_params=pltpu.CompilerParams(
            dimension_semantics=("parallel",) * len(grid),
            vmem_limit_bytes=vmem_limit,
        ),
        cost_estimate=pl.CostEstimate(
            flops=0,
            transcendentals=0,
            bytes_accessed=2 * x.size * itemsize,
        ),
    )(x)


def permute_axis(x: jax.Array, dims) -> jax.Array:
    """Equivalent of torch.Tensor.permute(*dims)."""
    ndim = x.ndim
    dims = tuple(int(d) % ndim for d in dims) if ndim else tuple(dims)
    assert sorted(dims) == list(range(ndim)), "dims must be a permutation"

    if ndim <= 1 or dims == tuple(range(ndim)):
        return x                        # identity permute: no HBM traffic
    out_shape = tuple(x.shape[d] for d in dims)

    # Normalize: drop size-1 axes and merge axes that stay adjacent & in-order.
    cshape, cdims = _collapse(x.shape, dims)
    cndim = len(cshape)
    if cndim <= 1 or cdims == tuple(range(cndim)):
        return x.reshape(out_shape)     # pure layout plumbing, no data movement

    # Pallas fast path: input lane axis stays in one of the last two output
    # positions AND the output lane dim is >= 128 (lane-dense writeback).
    if (cndim - 1) in (cdims[-2], cdims[-1]) and cshape[cdims[-1]] >= _MIN_LANE:
        y = _permute_lane_preserving(x.reshape(cshape), cdims)
        return y.reshape(out_shape)

    # TODO(synk): permutes that move the input's lane axis to a leading output
    # position, or whose collapsed output lane dim is < 128, would need a
    # two-stage / in-kernel relayout kernel; XLA's transpose beats a
    # lane-sparse (masked vst.msk) Pallas kernel there, so fall back.
    return jnp.transpose(x, dims)


class PermuteAxis:
    """Drop-in analogue of the PyTorch nn.Module."""

    def __init__(self, *dims):
        self.dims = [d for d in dims]

    def __call__(self, x: jax.Array) -> jax.Array:
        return permute_axis(x, self.dims)


if __name__ == "__main__":
    key = jax.random.PRNGKey(0)
    keys = jax.random.split(key, 8)

    def check(x, dims):
        y = jax.block_until_ready(permute_axis(x, dims))
        ref = jnp.transpose(x, dims)
        assert y.shape == ref.shape, (dims, y.shape, ref.shape)
        assert y.dtype == ref.dtype, (dims, y.dtype, ref.dtype)
        assert jnp.array_equal(y, ref), f"mismatch for dims={dims}"

    # (B, S, D) -> (B, D, S): canonical PermuteAxis(0, 2, 1), dense transpose path.
    x_a = jax.random.normal(keys[0], (2, 128, 128), dtype=jnp.float32)
    check(x_a, (0, 2, 1))

    # (B,C,H,W) -> (C,B,H,W): collapses to (1,0,2) on (2,4,512) -> strided
    # "padded input" copy branch with 3-deep input buffering.
    x_b = jax.random.normal(keys[1], (2, 4, 16, 32), dtype=jnp.float32)
    check(x_b, (1, 0, 2, 3))

    # NCHW -> NHWC: collapses to (0,2,1) on (2,128,256) -> dense transpose path.
    x_c = jax.random.normal(keys[2], (2, 128, 16, 16), dtype=jnp.float32)
    check(x_c, (0, 2, 3, 1))

    # Non-divisible extent: partial (masked) edge tiles (1100 = 1024 + 76).
    x_d = jax.random.normal(keys[3], (2, 1100, 128), dtype=jnp.float32)
    check(x_d, (0, 2, 1))

    # bf16: byte-based tile caps + packed XLU transpose.
    x_e = jax.random.normal(keys[4], (2, 256, 384)).astype(jnp.bfloat16)
    check(x_e, (0, 2, 1))

    # Size-1 axis dropping + axis merging -> plain 2-D Pallas transpose.
    x_f = jax.random.normal(keys[5], (1, 2, 128, 128), dtype=jnp.float32)
    check(x_f, (0, 3, 1, 2))

    # Lane-sparse output (collapsed last dim = 8 < 128): explicit XLA fallback.
    x_g = jax.random.normal(keys[6], (2, 8, 2048), dtype=jnp.float32)
    check(x_g, (0, 2, 1))

    # Input lane axis moves to a leading output position: XLA fallback.
    x_h = jax.random.normal(keys[7], (4, 16, 32), dtype=jnp.float32)
    check(x_h, (2, 1, 0))

    # Identity fast path.
    check(x_a, (0, 1, 2))

    # Module-style usage, mirroring the PyTorch spec.
    mod = PermuteAxis(0, 2, 1)
    y = jax.block_until_ready(mod(x_a))
    assert jnp.array_equal(y, jnp.transpose(x_a, (0, 2, 1)))

    print("KERNEL_OK")
</pallas_src>

<mosaic_0001>
module attributes {stable_mosaic.version = 11 : i64} {
  func.func @kernel(%arg0: i32, %arg1: i32, %arg2: i32, %arg3: memref<1x128x128xf32, #tpu.memory_space<vmem>>, %arg4: memref<1x128x128xf32, #tpu.memory_space<vmem>>) attributes {dimension_semantics = [#tpu.dimension_semantics<parallel>, #tpu.dimension_semantics<parallel>, #tpu.dimension_semantics<parallel>], iteration_bounds = array<i64: 2, 1, 1>, scalar_prefetch = 0 : i64, scratch_operands = 0 : i64, tpu.core_type = #tpu.core_type<tc>, window_params = [{transform_indices = @transform_0, window_bounds = array<i64: 1, 128, 128>}, {transform_indices = @transform_1, window_bounds = array<i64: 1, 128, 128>}]} {
    %c0 = arith.constant 0 : index
    %c0_0 = arith.constant 0 : index
    %c0_1 = arith.constant 0 : index
    %0 = vector.load %arg3[%c0, %c0_0, %c0_1] : memref<1x128x128xf32, #tpu.memory_space<vmem>>, vector<1x128x128xf32>
    %1 = vector.shape_cast %0 : vector<1x128x128xf32> to vector<128x128xf32>
    %2 = tpu.transpose %1, [1, 0] : vector<128x128xf32> -> vector<128x128xf32>
    %c0_2 = arith.constant 0 : index
    %c0_3 = arith.constant 0 : index
    %c0_4 = arith.constant 0 : index
    %3 = vector.load %arg4[%c0_2, %c0_3, %c0_4] : memref<1x128x128xf32, #tpu.memory_space<vmem>>, vector<1x128x128xf32>
    %4 = vector.shape_cast %3 : vector<1x128x128xf32> to vector<128x128xf32>
    %5 = vector.shape_cast %2 : vector<128x128xf32> to vector<1x128x128xf32>
    tpu.vector_store %arg4[%c0_2, %c0_3, %c0_4], %5 {strides = array<i32>} : memref<1x128x128xf32, #tpu.memory_space<vmem>>, vector<1x128x128xf32>,
    return
  }
  func.func @transform_0(%arg0: i32, %arg1: i32, %arg2: i32) -> (i32, i32, i32) {
    %c0_i32 = arith.constant 0 : i32
    return %arg0, %arg2, %arg1 : i32, i32, i32
  }
  func.func @transform_1(%arg0: i32, %arg1: i32, %arg2: i32) -> (i32, i32, i32) {
    %c0_i32 = arith.constant 0 : i32
    return %arg0, %arg1, %arg2 : i32, i32, i32
  }
}

</mosaic_0001>

<bundles_post_ra>
// kernel: tpu_custom_call.1
= control target key start
LH: loop header
LB: loop body
LE: loop exit
PB: predicated region body
PF: predicated region fallthrough
CT: control target
= control target key end

     0   :  { %6 = vsyncpa [#allocation3], 0  ;;  %s736_s0 = inlined_call_operand.hbm [shape: f32[2,128,128], index: 0, kind: input, shape index: {}]   ;;  %s737_s1 = inlined_call_operand.hbm [shape: f32[2,128,128], index: 1, kind: output, shape index: {}]  }
   0x1   :  { %8 = vsyncpa [#allocation3 + $0x1], 0 }
   0x2   :  { %9 = vsyncpa [#allocation4], 0 }
   0x3   :  { %11 = vsyncpa [#allocation4 + $0x1], 0  ;;  %s549_s6 = smov 0   ;;  %s551_s7 = smov 0  }
   0x4   :  { %s553_s8 = smov 0   ;;  %s555_s9 = smov 0  }
   0x5   :  { %s557_s10 = smov 0   ;;  %s559_s11 = smov 0  }
   0x6 LB: > { %s340_s12 = sadd.s32 4294967295, %s531_s11   ;;  %s341_s13 = sadd.s32 4294967294, %s531_s11   ;;  %s531_s11 = sphi %s559_s11, %s17_s11   ;;  %s527_s10 = sphi %s557_s10, %s748_s10   ;;  %s523_s9 = sphi %s555_s9, %s747_s9   ;;  %s519_s8 = sphi %s553_s8, %s746_s8   ;;  %s515_s7 = sphi %s551_s7, %s745_s7   ;;  %s511_s6 = sphi %s549_s6, %s744_s6  }
   0x7   : > { %s36_s14 = sadd.s32 1, %s527_s10  ;;  %s47_s15 = sadd.s32 1, %s519_s8 }
   0x8   : > { %p38_p0 = scmp.ge.s32.totalorder %s36_s14, 2  ;;  %p54_p1 = scmp.ne.s32.totalorder %s519_s8, %s515_s7 }
   0x9   : > { %p55_p2 = scmp.eq.s32.totalorder %s531_s11, 0  ;;  %p60_p3 = scmp.ne.s32.totalorder %s515_s7, %s511_s6 }
   0xa   : > { %s750_s14 = smov (%p38_p0, %s36_s14), 0  ;;  %p61_p5 = scmp.eq.s32.totalorder %s340_s12, 0 }
   0xb   : > { %p590_p4 = por %p55_p2, %p54_p1  ;;  %s40_s17 = ssub.s32 %s527_s10, %s750_s14 }
   0xc   : > { %p88_p6 = scmp.eq.s32.totalorder %s340_s12, 1  ;;  %p45_p7 = scmp.eq.s32.totalorder %s40_s17, 0 }
   0xd   : > { %p596_p8 = por %p61_p5, %p60_p3  ;;  %p94_p10 = scmp.eq.s32.totalorder %s341_s13, 1 }
   0xe   : > { %p600_p9 = por %p88_p6, %p54_p1  ;;  %p369_p13 = scmp.lt.s32.totalorder %s531_s11, 2 }
   0xf   : > { %s605_s20 = scalar_select %p45_p7, %s519_s8, %s47_s15  }
  0x10   : > { %p607_p11 = por %p94_p10, %p60_p3  ;;  %s114_s22 = sand.u32 1, %s519_s8  }
  0x11   : > { %s344_s23 = sshll.u32 %s114_s22, 7  ;;  %s355_s24 = sshll.u32 %s527_s10, 11 }
  0x12   : > { %s127_s27 = scalar_lea.hbm %s736_s0, %s355_s24  ;;  %s118_s28 = scalar_lea.vmem [#allocation2], %s344_s23 }
  0x13   : > { %s128_s29 = sshll.u32 %s118_s28, 4  ;;  %p620_p0 = pnand %p369_p13, %p590_p4  ;;  %s129_s29 = int_to_ptr.vmem [resolvable:$true] %s128_s29 }
  0x14   : > { %p347_p1 = scmp.ge.s32.totalorder %s531_s11, 1  ;;  %s115_s2 = scalar_lea.sflag [#allocation3], %s114_s22 }
  0x15   : > { %p425_p2 = pneg %p620_p0  ;;  %s436_s3 = scalar_lea.vmem %s129_s29, 2048 }
  0x16   : > { %p437_p3 = scmp.ne.s32.totalorder %s129_s29, %s436_s3  ;;  %s533_s4 = smov [#allocation2]  }
  0x17   : > { %s441_s5 = sshll.u32 %s533_s4, 4  ;;  %s442_s5 = int_to_ptr.vmem [resolvable:$false] %s441_s5 }
  0x18   : > { %p439_p5 = pnand %p437_p3, %p425_p2  ;;  %s443_s12 = scalar_lea.vmem %s442_s5, 4096 }
  0x19   : > { %p444_p7 = scmp.lt.s32.totalorder %s129_s29, %s442_s5  ;;  %p445_p10 = scmp.lt.s32.totalorder %s443_s12, %s436_s3 }
  0x1a   : > { %p440_p6 = pneg %p439_p5 }
  0x1b   : > { %p446_p12 = por %p445_p10, %p444_p7 }
  0x1d   : > { %p447_p4 = pnand %p446_p12, %p440_p6 }
  0x1f   : > { %450 = shalt.err (!%p447_p4)
}
  0x20   : > { %s534_s13 = smov 128   ;;  %s535_s15 = smov 8  }
  0x21   : > { %364 = dma.hbm_to_vmem [thread:$0]  (!%p620_p0), %s127_s27, 2048, %s129_s29, %s115_s2, %s534_s13, %s534_s13, %s535_s15  }
  0x22   : > { %p136_p13 = scmp.lt.s32.totalorder %s531_s11, 3 }
  0x24   : > { %p137_p2 = pnand %p347_p1, %p136_p13 }
  0x25   : > { %s633_s16 = sand.u32 (!%p137_p2), 1, %s515_s7  }
  0x26   : > { %140 = sbr.rel (%p137_p2) target bundleno = 244 (0xf4), region = 24  ;;  %s348_s17 = sshll.u32 (!%p137_p2), %s633_s16, 7 }
  0x27   : > { %s143_s22 = scalar_lea.sflag (!%p137_p2), [#allocation3], %s633_s16  ;;  %s639_s23 = scalar_lea.vmem (!%p137_p2), [#allocation2], %s348_s17 }
  0x2b   : > { %502 = dma.done.wait (%p596_p8), %s143_s22, 2048  }
  0x2c   : > { %504 = vsyncadd (%p596_p8), %s143_s22, 4294965248  ;;  %v167_v0 = vld [vmem:[%s639_s23] sm:$0xff]  ;;  %v168_v1 = vld [vmem:[%s639_s23 + $0x8] sm:$0xff]  ;;  %s663_s18 = scalar_lea.vmem [#allocation5], %s348_s17  ;;  %s356_s24 = sshll.u32 %s523_s9, 11 }
  0x2d   : > { %183 = vxpose.xlu0.b32.start [1/16] %v167_v0, 128  ;;  %v169_v2 = vld [vmem:[%s639_s23 + $0x10] sm:$0xff]  ;;  %v170_v3 = vld [vmem:[%s639_s23 + $0x18] sm:$0xff]  ;;  %v171_v4 = vld [vmem:[%s639_s23 + $0x20] sm:$0xff]  ;;  %s248_s25 = sshll.u32 %s663_s18, 4  ;;  %s685_s28 = scalar_lea.hbm %s737_s1, %s356_s24  ;;  %s687_s25 = int_to_ptr.vmem [resolvable:$true] %s248_s25 }
  0x2e   : > { %v172_v5 = vld [vmem:[%s639_s23 + $0x28] sm:$0xff]  ;;  %v173_v6 = vld [vmem:[%s639_s23 + $0x30] sm:$0xff]  ;;  %v174_v7 = vld [vmem:[%s639_s23 + $0x38] sm:$0xff]  ;;  %s232_s29 = scalar_lea.sflag [#allocation4], %s633_s16  ;;  %s451_s30 = scalar_lea.vmem %s687_s25, 2048 }
  0x2f   : > { %v175_v8 = vld [vmem:[%s639_s23 + $0x40] sm:$0xff]  ;;  %v176_v9 = vld [vmem:[%s639_s23 + $0x48] sm:$0xff]  ;;  %v177_v10 = vld [vmem:[%s639_s23 + $0x50] sm:$0xff]  ;;  %p452_p8 = scmp.ne.s32.totalorder %s687_s25, %s451_s30  ;;  %s536_s9 = smov [#allocation5]  }
  0x30   : > { %v178_v11 = vld [vmem:[%s639_s23 + $0x58] sm:$0xff]  ;;  %v179_v12 = vld [vmem:[%s639_s23 + $0x60] sm:$0xff]  ;;  %v180_v13 = vld [vmem:[%s639_s23 + $0x68] sm:$0xff]  ;;  %s455_s2 = sshll.u32 %s536_s9, 4  ;;  %s456_s2 = int_to_ptr.vmem [resolvable:$false] %s455_s2 }
  0x31   : > { %184 = vxpose.xlu0.b32.cont [2/16] %v168_v1, 128  ;;  %v181_v14 = vld [vmem:[%s639_s23 + $0x70] sm:$0xff]  ;;  %v182_v15 = vld [vmem:[%s639_s23 + $0x78] sm:$0xff]  ;;  %p453_p12 = pnand %p452_p8, %p600_p9  ;;  %s457_s3 = scalar_lea.vmem %s456_s2, 4096 }
  0x32   : > { %p458_p1 = scmp.lt.s32.totalorder %s687_s25, %s456_s2  ;;  %p459_p3 = scmp.lt.s32.totalorder %s457_s3, %s451_s30 }
  0x33   : > { %p454_p0 = pneg %p453_p12 }
  0x34   : > { %p460_p5 = por %p459_p3, %p458_p1 }
  0x35   : > { %185 = vxpose.xlu0.b32.cont [3/16] %v169_v2, 128 }
  0x36   : > { %p461_p6 = pnand %p460_p5, %p454_p0 }
  0x39   : > { %186 = vxpose.xlu0.b32.cont [4/16] %v170_v3, 128 }
  0x3d   : > { %187 = vxpose.xlu0.b32.cont [5/16] %v171_v4, 128 }
  0x41   : > { %188 = vxpose.xlu0.b32.cont [6/16] %v172_v5, 128 }
  0x45   : > { %189 = vxpose.xlu0.b32.cont [7/16] %v173_v6, 128 }
  0x49   : > { %190 = vxpose.xlu0.b32.cont [8/16] %v174_v7, 128 }
  0x4d   : > { %191 = vxpose.xlu0.b32.cont [9/16] %v175_v8, 128 }
  0x51   : > { %192 = vxpose.xlu0.b32.cont [10/16] %v176_v9, 128 }
  0x55   : > { %193 = vxpose.xlu0.b32.cont [11/16] %v177_v10, 128 }
  0x59   : > { %194 = vxpose.xlu0.b32.cont [12/16] %v178_v11, 128 }
  0x5d   : > { %195 = vxpose.xlu0.b32.cont [13/16] %v179_v12, 128 }
  0x61   : > { %196 = vxpose.xlu0.b32.cont [14/16] %v180_v13, 128 }
  0x65   : > { %197 = vxpose.xlu0.b32.cont [15/16] %v181_v14, 128 }
  0x69   : > { %198 = vxpose.xlu0.b32.end [16/16] %v182_v15, 128 }
  0xa9   : > { %v199_v16 = vpop.trf.xlu0 }
  0xaa   : > { %215 = vst [vmem:[%s663_s18] sm:$0xff] %v199_v16 }
  0xad   : > { %v200_v17 = vpop.trf.xlu0 }
  0xae   : > { %216 = vst [vmem:[%s663_s18 + $0x8] sm:$0xff] %v200_v17 }
  0xb1   : > { %v201_v18 = vpop.trf.xlu0 }
  0xb2   : > { %217 = vst [vmem:[%s663_s18 + $0x10] sm:$0xff] %v201_v18 }
  0xb5   : > { %v202_v19 = vpop.trf.xlu0 }
  0xb6   : > { %218 = vst [vmem:[%s663_s18 + $0x18] sm:$0xff] %v202_v19 }
  0xb9   : > { %v203_v20 = vpop.trf.xlu0 }
  0xba   : > { %219 = vst [vmem:[%s663_s18 + $0x20] sm:$0xff] %v203_v20 }
  0xbd   : > { %v204_v21 = vpop.trf.xlu0 }
  0xbe   : > { %220 = vst [vmem:[%s663_s18 + $0x28] sm:$0xff] %v204_v21 }
  0xc1   : > { %v205_v22 = vpop.trf.xlu0 }
  0xc2   : > { %221 = vst [vmem:[%s663_s18 + $0x30] sm:$0xff] %v205_v22 }
  0xc5   : > { %v206_v23 = vpop.trf.xlu0 }
  0xc6   : > { %222 = vst [vmem:[%s663_s18 + $0x38] sm:$0xff] %v206_v23 }
  0xc9   : > { %v207_v24 = vpop.trf.xlu0 }
  0xca   : > { %223 = vst [vmem:[%s663_s18 + $0x40] sm:$0xff] %v207_v24 }
  0xcd   : > { %v208_v25 = vpop.trf.xlu0 }
  0xce   : > { %224 = vst [vmem:[%s663_s18 + $0x48] sm:$0xff] %v208_v25 }
  0xd1   : > { %v209_v26 = vpop.trf.xlu0 }
  0xd2   : > { %225 = vst [vmem:[%s663_s18 + $0x50] sm:$0xff] %v209_v26 }
  0xd5   : > { %v210_v27 = vpop.trf.xlu0 }
  0xd6   : > { %226 = vst [vmem:[%s663_s18 + $0x58] sm:$0xff] %v210_v27 }
  0xd9   : > { %v211_v28 = vpop.trf.xlu0 }
  0xda   : > { %227 = vst [vmem:[%s663_s18 + $0x60] sm:$0xff] %v211_v28 }
  0xdd   : > { %v212_v29 = vpop.trf.xlu0 }
  0xde   : > { %228 = vst [vmem:[%s663_s18 + $0x68] sm:$0xff] %v212_v29 }
  0xe1   : > { %v213_v30 = vpop.trf.xlu0 }
  0xe2   : > { %229 = vst [vmem:[%s663_s18 + $0x70] sm:$0xff] %v213_v30 }
  0xe5   : > { %v214_v31 = vpop.trf.xlu0 }
  0xe6   : > { %230 = vst [vmem:[%s663_s18 + $0x78] sm:$0xff] %v214_v31 }
  0xe7   : > { %464 = shalt.err (!%p461_p6)
}
  0xe8   : > { %s465_s4 = scalar_lea.hbm %s685_s28, 2048  ;;  %s469_s13 = scalar_lea.hbm %s737_s1, 4096 }
  0xe9   : > { %p466_p7 = scmp.ne.s32.totalorder %s685_s28, %s465_s4  ;;  %p470_p13 = scmp.lt.s32.totalorder %s685_s28, %s737_s1 }
  0xea   : > { %p471_p2 = scmp.lt.s32.totalorder %s469_s13, %s465_s4 }
  0xeb   : > { %p467_p10 = pnand %p466_p7, %p600_p9 }
  0xec   : > { %p472_p8 = por %p471_p2, %p470_p13 }
  0xed   : > { %p468_p4 = pneg %p467_p10 }
  0xef   : > { %p473_p12 = pnand %p472_p8, %p468_p4 }
  0xf1   : > { %476 = shalt.err (!%p473_p12)
}
  0xf2   : > { %s537_s22 = smov 128   ;;  %s538_s23 = smov 8  }
  0xf3   : > { %359 = dma.vmem_to_hbm [thread:$0]  (%p600_p9), %s687_s25, 2048, %s685_s28, %s232_s29, %s537_s22, %s537_s22, %s538_s23  }
  0xf4 PF: > { %s263_s18 = sand.u32 1, %s511_s6   ;;  %p743_p0 = scmp.ge.s32.totalorder %s531_s11, 2 }
  0xf5   : > { %s264_s24 = scalar_lea.sflag [#allocation4], %s263_s18 }
  0xf6   : > { %p366_p1 = pnand %p743_p0, %p607_p11 }
  0xf8   : > { %p367_p3 = pneg %p366_p1 }
  0xfa   : > { %506 = dma.done.wait (%p367_p3), %s264_s24, 2048  }
  0xfb   : > { %508 = vsyncadd (%p367_p3), %s264_s24, 4294965248  ;;  %s17_s11 = sadd.s32 1, %s531_s11   ;;  %s744_s6 = smov %s515_s7 }
  0xfc   : > { %p14_p5 = scmp.ge.s32.totalorder %s17_s11, 4   ;;  %s745_s7 = smov %s519_s8 }
  0xfd   : > { %s746_s8 = smov %s605_s20  ;;  %s747_s9 = smov %s527_s10 }
  0xfe   : > { %s748_s10 = smov %s750_s14  ;;  %16 = sbr.rel (!%p14_p5) target bundleno = 6 (0x6), region = 69 }
 0x103   :  { %269 = vsyncpa [#allocation3], 1 }
 0x104   :  { %271 = vsyncpa [#allocation3 + $0x1], 1 }
 0x105   :  { %272 = vsyncpa [#allocation4], 1 }
 0x106   :  { %274 = vsyncpa [#allocation4 + $0x1], 1 }

</bundles_post_ra>
